<compile_context>
chip_gen: v7x
topology: tpu7x:2x2x1
jax: 0.10.0
libtpu: 0.0.40
codegen_flags: <defaults>
</compile_context>

<pallas_src>
import functools

import jax
import jax.numpy as jnp
from jax import lax
from jax.experimental import pallas as pl
from jax.experimental.pallas import tpu as pltpu


# ----------------------------- kernel helpers -----------------------------

def _layernorm(x, gamma, beta, eps=1e-5):
    mean = jnp.mean(x, axis=-1, keepdims=True)
    var = jnp.mean((x - mean) ** 2, axis=-1, keepdims=True)  # biased var (torch LayerNorm)
    return (x - mean) * lax.rsqrt(var + eps) * gamma + beta


def _gelu_exact(x):
    # torch.nn.GELU() default = exact erf formulation
    return 0.5 * x * (1.0 + lax.erf(x * jnp.float32(0.7071067811865476)))


def _softmax_last(x):
    x = x - jnp.max(x, axis=-1, keepdims=True)
    e = jnp.exp(x)
    return e * pl.reciprocal(jnp.sum(e, axis=-1, keepdims=True), approx=True)


# ------------------------------- the kernel -------------------------------

def encoder_kernel(x_ref, bias_ref,
                   wqkv_ref, bqkv_ref, wo_ref, bo_ref,
                   g1_ref, be1_ref, w1_ref, b1_ref, w2_ref, b2_ref,
                   g2_ref, be2_ref, o_ref, *, num_heads, head_dim, inv_scale):
    B, S, D_in = x_ref.shape
    H, Dh = num_heads, head_dim
    bf16 = jnp.bfloat16

    x = x_ref[...]                                   # (B, S, D_in) f32
    xb = x.reshape(B * S, D_in)                      # merge batch & seq (layout-trivial)

    # --- fused QKV projection: one MXU matmul instead of 3*H tiny ones ---
    qkv = jnp.dot(xb.astype(bf16), wqkv_ref[...],
                  preferred_element_type=jnp.float32) + bqkv_ref[...]   # (B*S, 3*H*Dh) f32

    bias = bias_ref[...]                             # (B, 1, S) additive mask bias (0 / -1e9)

    # --- per-head attention core (scores/softmax/context), batched over B via einsum ---
    heads = []
    for h in range(H):                               # static loop; only the S x S core per head
        q = qkv[:, h * Dh:(h + 1) * Dh].reshape(B, S, Dh).astype(bf16)
        k = qkv[:, (H + h) * Dh:(H + h + 1) * Dh].reshape(B, S, Dh).astype(bf16)
        v = qkv[:, (2 * H + h) * Dh:(2 * H + h + 1) * Dh].reshape(B, S, Dh).astype(bf16)
        s = jnp.einsum('bqd,bkd->bqk', q, k,
                       preferred_element_type=jnp.float32) * inv_scale + bias
        p = _softmax_last(s)
        heads.append(jnp.einsum('bqk,bkd->bqd', p.astype(bf16), v,
                                preferred_element_type=jnp.float32))

    cat = jnp.concatenate(heads, axis=-1).reshape(B * S, H * Dh)        # (B*S, H*Dh)

    # --- fused output projection over all heads + LayerNorm ---
    ctx = jnp.dot(cat.astype(bf16), wo_ref[...],
                  preferred_element_type=jnp.float32) + bo_ref[...]
    ctx = _layernorm(ctx, g1_ref[...], be1_ref[...])

    # --- feed forward (dropout is identity at inference) ---
    # TODO(synk): nn.Dropout is a no-op in eval mode; training-mode dropout not implemented.
    h1 = jnp.dot(ctx.astype(bf16), w1_ref[...],
                 preferred_element_type=jnp.float32) + b1_ref[...]
    h1 = _gelu_exact(h1)
    ff = jnp.dot(h1.astype(bf16), w2_ref[...],
                 preferred_element_type=jnp.float32) + b2_ref[...]
    out = _layernorm(ff, g2_ref[...], be2_ref[...])

    o_ref[...] = out.reshape(B, S, D_in).astype(o_ref.dtype)


# ------------------------------ host wrapper -------------------------------

def encoder_forward(x, mask, params, *, num_heads):
    B, S, D_in = x.shape
    Dh = params["wq"].shape[-1]
    scale = float(S) ** 0.5          # matches torch: query.size(1) ** 0.5
    inv_scale = 1.0 / scale
    bf16 = jnp.bfloat16

    def cat_heads_w(w):              # (H, D_in, Dh) -> (D_in, H*Dh), head-major columns
        return jnp.transpose(w, (1, 0, 2)).reshape(D_in, num_heads * Dh)

    def cat_heads_b(b):              # (H, 1, Dh) -> (1, H*Dh)
        return jnp.transpose(b, (1, 0, 2)).reshape(1, num_heads * Dh)

    # fused weights; matmul operands cast to bf16 once on the host (f32 accumulation in-kernel)
    wqkv = jnp.concatenate([cat_heads_w(params["wq"]),
                            cat_heads_w(params["wk"]),
                            cat_heads_w(params["wv"])], axis=1).astype(bf16)   # (D_in, 3*H*Dh)
    bqkv = jnp.concatenate([cat_heads_b(params["bq"]),
                            cat_heads_b(params["bk"]),
                            cat_heads_b(params["bv"])], axis=1)                # (1, 3*H*Dh) f32
    wo = params["wo"].reshape(num_heads * Dh, D_in).astype(bf16)
    w1 = params["w1"].astype(bf16)
    w2 = params["w2"].astype(bf16)

    # additive attention bias: 0 where visible, -1e9 where masked (replaces compare+select)
    bias = ((mask.astype(jnp.float32) - 1.0) * 1e9).reshape(B, 1, S)

    operands = (x, bias, wqkv, bqkv, wo, params["bo"],
                params["g1"], params["be1"], w1, params["b1"],
                w2, params["b2"], params["g2"], params["be2"])

    def full_spec(a):
        nd = a.ndim
        return pl.BlockSpec(a.shape, lambda i, _nd=nd: (0,) * _nd)

    kernel = functools.partial(encoder_kernel, num_heads=num_heads,
                               head_dim=Dh, inv_scale=inv_scale)

    return pl.pallas_call(
        kernel,
        out_shape=jax.ShapeDtypeStruct((B, S, D_in), jnp.float32),
        grid=(1,),                   # single grid step: everything resident in VMEM
        in_specs=[full_spec(a) for a in operands],
        out_specs=pl.BlockSpec((B, S, D_in), lambda i: (0, 0, 0)),
        compiler_params=pltpu.CompilerParams(dimension_semantics=("arbitrary",)),
    )(*operands)


# ------------------------- pure-JAX reference model -------------------------

def encoder_reference(x, mask, p, *, num_heads, matmul_dtype=jnp.float32):
    """Reference. matmul_dtype=bf16 mirrors the kernel's mixed-precision matmul policy."""
    B, S, D_in = x.shape
    H = num_heads
    scale = float(S) ** 0.5
    md = matmul_dtype
    m = mask.reshape(B, 1, S)

    def mm(eq, a, b):
        return jnp.einsum(eq, a.astype(md), b.astype(md),
                          preferred_element_type=jnp.float32)

    heads = []
    for h in range(H):
        q = mm('bsd,df->bsf', x, p["wq"][h]) + p["bq"][h]
        k = mm('bsd,df->bsf', x, p["wk"][h]) + p["bk"][h]
        v = mm('bsd,df->bsf', x, p["wv"][h]) + p["bv"][h]
        s = mm('bqd,bkd->bqk', q, k) / scale
        s = jnp.where(m == 0, -1e9, s)
        a = jax.nn.softmax(s, axis=-1)
        heads.append(mm('bqk,bkd->bqd', a, v))
    cat = jnp.concatenate(heads, axis=-1)
    wo_cat = p["wo"].reshape(H * p["wo"].shape[1], D_in)
    ctx = mm('bsf,fd->bsd', cat, wo_cat) + p["bo"][0]

    def ln(z, g, b):
        mu = jnp.mean(z, -1, keepdims=True)
        var = jnp.mean((z - mu) ** 2, -1, keepdims=True)
        return (z - mu) * lax.rsqrt(var + 1e-5) * g + b

    ctx = ln(ctx, p["g1"][0], p["be1"][0])
    h1 = jax.nn.gelu(mm('bsd,df->bsf', ctx, p["w1"]) + p["b1"][0], approximate=False)
    ff = mm('bsf,fd->bsd', h1, p["w2"]) + p["b2"][0]
    return ln(ff, p["g2"][0], p["be2"][0])


# ---------------------------------- main ------------------------------------

if __name__ == "__main__":
    B, S, D_in, D_out, H = 2, 8, 32, 16, 4

    key = jax.random.PRNGKey(0)
    ks = jax.random.split(key, 16)

    def rnd(k, shape, scl=0.1):
        return (scl * jax.random.normal(k, shape)).astype(jnp.float32)

    params = dict(
        wq=rnd(ks[0], (H, D_in, D_out)), bq=rnd(ks[1], (H, 1, D_out)),
        wk=rnd(ks[2], (H, D_in, D_out)), bk=rnd(ks[3], (H, 1, D_out)),
        wv=rnd(ks[4], (H, D_in, D_out)), bv=rnd(ks[5], (H, 1, D_out)),
        wo=rnd(ks[6], (H, D_out, D_in)), bo=rnd(ks[7], (1, D_in)),
        g1=jnp.ones((1, D_in), jnp.float32), be1=jnp.zeros((1, D_in), jnp.float32),
        w1=rnd(ks[8], (D_in, D_out)), b1=rnd(ks[9], (1, D_out)),
        w2=rnd(ks[10], (D_out, D_in)), b2=rnd(ks[11], (1, D_in)),
        g2=jnp.ones((1, D_in), jnp.float32), be2=jnp.zeros((1, D_in), jnp.float32),
    )

    x = rnd(ks[12], (B, S, D_in), scl=1.0)
    # attention mask: row 0 fully visible, row 1 has last two positions masked out
    mask = jnp.array([[1] * S, [1] * (S - 2) + [0] * 2], dtype=jnp.int32)

    out = jax.block_until_ready(encoder_forward(x, mask, params, num_heads=H))
    assert out.shape == (B, S, D_in)

    # Tight check vs. a reference with matching mixed precision (bf16 matmul inputs, f32 accum),
    # plus a loose semantics check vs. pure-f32 math (quantifies the bf16 matmul error only).
    ref_bf16 = encoder_reference(x, mask, params, num_heads=H, matmul_dtype=jnp.bfloat16)
    ref_f32 = encoder_reference(x, mask, params, num_heads=H, matmul_dtype=jnp.float32)
    assert jnp.allclose(out, ref_bf16, rtol=1e-2, atol=1e-2), "mismatch vs. bf16-matmul reference"
    assert jnp.allclose(out, ref_f32, rtol=2e-1, atol=2e-1), "mismatch vs. f32 reference"

    print("KERNEL_OK")
</pallas_src>

<mosaic_0001>
module attributes {stable_mosaic.version = 11 : i64} {
  func.func @encoder_kernel(%arg0: i32, %arg1: memref<2x8x32xf32, #tpu.memory_space<vmem>>, %arg2: memref<2x1x8xf32, #tpu.memory_space<vmem>>, %arg3: memref<32x192xbf16, #tpu.memory_space<vmem>>, %arg4: memref<1x192xf32, #tpu.memory_space<vmem>>, %arg5: memref<64x32xbf16, #tpu.memory_space<vmem>>, %arg6: memref<1x32xf32, #tpu.memory_space<vmem>>, %arg7: memref<1x32xf32, #tpu.memory_space<vmem>>, %arg8: memref<1x32xf32, #tpu.memory_space<vmem>>, %arg9: memref<32x16xbf16, #tpu.memory_space<vmem>>, %arg10: memref<1x16xf32, #tpu.memory_space<vmem>>, %arg11: memref<16x32xbf16, #tpu.memory_space<vmem>>, %arg12: memref<1x32xf32, #tpu.memory_space<vmem>>, %arg13: memref<1x32xf32, #tpu.memory_space<vmem>>, %arg14: memref<1x32xf32, #tpu.memory_space<vmem>>, %arg15: memref<2x8x32xf32, #tpu.memory_space<vmem>>) attributes {dimension_semantics = [#tpu.dimension_semantics<arbitrary>], iteration_bounds = array<i64: 1>, scalar_prefetch = 0 : i64, scratch_operands = 0 : i64, tpu.core_type = #tpu.core_type<tc>, window_params = [{pipeline_mode = #tpu.pipeline_mode<synchronous>, transform_indices = @transform_0, window_bounds = array<i64: 2, 8, 32>}, {pipeline_mode = #tpu.pipeline_mode<synchronous>, transform_indices = @transform_1, window_bounds = array<i64: 2, 1, 8>}, {pipeline_mode = #tpu.pipeline_mode<synchronous>, transform_indices = @transform_2, window_bounds = array<i64: 32, 192>}, {pipeline_mode = #tpu.pipeline_mode<synchronous>, transform_indices = @transform_3, window_bounds = array<i64: 1, 192>}, {pipeline_mode = #tpu.pipeline_mode<synchronous>, transform_indices = @transform_4, window_bounds = array<i64: 64, 32>}, {pipeline_mode = #tpu.pipeline_mode<synchronous>, transform_indices = @transform_5, window_bounds = array<i64: 1, 32>}, {pipeline_mode = #tpu.pipeline_mode<synchronous>, transform_indices = @transform_6, window_bounds = array<i64: 1, 32>}, {pipeline_mode = #tpu.pipeline_mode<synchronous>, transform_indices = @transform_7, window_bounds = array<i64: 1, 32>}, {pipeline_mode = #tpu.pipeline_mode<synchronous>, transform_indices = @transform_8, window_bounds = array<i64: 32, 16>}, {pipeline_mode = #tpu.pipeline_mode<synchronous>, transform_indices = @transform_9, window_bounds = array<i64: 1, 16>}, {pipeline_mode = #tpu.pipeline_mode<synchronous>, transform_indices = @transform_10, window_bounds = array<i64: 16, 32>}, {pipeline_mode = #tpu.pipeline_mode<synchronous>, transform_indices = @transform_11, window_bounds = array<i64: 1, 32>}, {pipeline_mode = #tpu.pipeline_mode<synchronous>, transform_indices = @transform_12, window_bounds = array<i64: 1, 32>}, {pipeline_mode = #tpu.pipeline_mode<synchronous>, transform_indices = @transform_13, window_bounds = array<i64: 1, 32>}, {pipeline_mode = #tpu.pipeline_mode<synchronous>, transform_indices = @transform_14, window_bounds = array<i64: 2, 8, 32>}]} {
    %c0 = arith.constant 0 : index
    %c0_0 = arith.constant 0 : index
    %c0_1 = arith.constant 0 : index
    %0 = vector.load %arg1[%c0, %c0_0, %c0_1] : memref<2x8x32xf32, #tpu.memory_space<vmem>>, vector<2x8x32xf32>
    %1 = vector.shape_cast %0 : vector<2x8x32xf32> to vector<16x32xf32>
    %2 = arith.truncf %1 : vector<16x32xf32> to vector<16x32xbf16>
    %c0_2 = arith.constant 0 : index
    %c0_3 = arith.constant 0 : index
    %3 = vector.load %arg3[%c0_2, %c0_3] : memref<32x192xbf16, #tpu.memory_space<vmem>>, vector<32x192xbf16>
    %cst = arith.constant dense<0.000000e+00> : vector<16x192xf32>
    %4 = tpu.matmul %2, %3, %cst {dimension_numbers = #tpu.dot_dimension_numbers<[1], [0], [0], [1], [0, 0, 1, 1], [], []>} : vector<16x32xbf16>, vector<32x192xbf16>, vector<16x192xf32> -> vector<16x192xf32>
    %c0_4 = arith.constant 0 : index
    %c0_5 = arith.constant 0 : index
    %5 = vector.load %arg4[%c0_4, %c0_5] : memref<1x192xf32, #tpu.memory_space<vmem>>, vector<1x192xf32>
    %6 = vector.broadcast %5 : vector<1x192xf32> to vector<16x192xf32>
    %7 = arith.addf %4, %6 : vector<16x192xf32>
    %c0_6 = arith.constant 0 : index
    %c0_7 = arith.constant 0 : index
    %c0_8 = arith.constant 0 : index
    %8 = vector.load %arg2[%c0_6, %c0_7, %c0_8] : memref<2x1x8xf32, #tpu.memory_space<vmem>>, vector<2x1x8xf32>
    %9 = vector.extract_strided_slice %7 {offsets = [0, 0], sizes = [16, 16], strides = [1, 1]} : vector<16x192xf32> to vector<16x16xf32>
    %10 = vector.shape_cast %9 : vector<16x16xf32> to vector<2x8x16xf32>
    %11 = arith.truncf %10 : vector<2x8x16xf32> to vector<2x8x16xbf16>
    %12 = vector.extract_strided_slice %7 {offsets = [0, 64], sizes = [16, 16], strides = [1, 1]} : vector<16x192xf32> to vector<16x16xf32>
    %13 = vector.shape_cast %12 : vector<16x16xf32> to vector<2x8x16xf32>
    %14 = arith.truncf %13 : vector<2x8x16xf32> to vector<2x8x16xbf16>
    %15 = vector.extract_strided_slice %7 {offsets = [0, 128], sizes = [16, 16], strides = [1, 1]} : vector<16x192xf32> to vector<16x16xf32>
    %16 = vector.shape_cast %15 : vector<16x16xf32> to vector<2x8x16xf32>
    %17 = arith.truncf %16 : vector<2x8x16xf32> to vector<2x8x16xbf16>
    "tpu.trace_start"() <{level = 10 : i32, message = "bqd,bkd->bqk"}> : () -> ()
    %cst_9 = arith.constant dense<0.000000e+00> : vector<2x8x8xf32>
    %18 = tpu.matmul %11, %14, %cst_9 {dimension_numbers = #tpu.dot_dimension_numbers<[2], [2], [1], [1], [0, 0, 0, 1, 1, 1], [0], [0]>} : vector<2x8x16xbf16>, vector<2x8x16xbf16>, vector<2x8x8xf32> -> vector<2x8x8xf32>
    "tpu.trace_stop"() : () -> ()
    %cst_10 = arith.constant 0.353553385 : f32
    %19 = vector.broadcast %cst_10 : f32 to vector<2x8x8xf32>
    %20 = arith.mulf %18, %19 : vector<2x8x8xf32>
    %21 = vector.broadcast %8 : vector<2x1x8xf32> to vector<2x8x8xf32>
    %22 = arith.addf %20, %21 : vector<2x8x8xf32>
    %cst_11 = arith.constant dense<0xFF800000> : vector<2x8xf32>
    %23 = vector.multi_reduction <maximumf>, %22, %cst_11 [2] : vector<2x8x8xf32> to vector<2x8xf32>
    %24 = vector.shape_cast %23 : vector<2x8xf32> to vector<2x8x1xf32>
    %25 = vector.broadcast %24 : vector<2x8x1xf32> to vector<2x8x8xf32>
    %26 = arith.subf %22, %25 : vector<2x8x8xf32>
    %27 = math.exp %26 : vector<2x8x8xf32>
    %cst_12 = arith.constant dense<0.000000e+00> : vector<2x8xf32>
    %28 = vector.multi_reduction <add>, %27, %cst_12 [2] : vector<2x8x8xf32> to vector<2x8xf32>
    %29 = vector.shape_cast %28 : vector<2x8xf32> to vector<2x8x1xf32>
    %30 = tpu.reciprocal %29 {approx = true} : vector<2x8x1xf32> -> vector<2x8x1xf32>
    %31 = vector.broadcast %30 : vector<2x8x1xf32> to vector<2x8x8xf32>
    %32 = arith.mulf %27, %31 : vector<2x8x8xf32>
    %33 = arith.truncf %32 : vector<2x8x8xf32> to vector<2x8x8xbf16>
    "tpu.trace_start"() <{level = 10 : i32, message = "bqk,bkd->bqd"}> : () -> ()
    %cst_13 = arith.constant dense<0.000000e+00> : vector<2x8x16xf32>
    %34 = tpu.matmul %33, %17, %cst_13 {dimension_numbers = #tpu.dot_dimension_numbers<[2], [1], [1], [2], [0, 0, 0, 1, 1, 2], [0], [0]>} : vector<2x8x8xbf16>, vector<2x8x16xbf16>, vector<2x8x16xf32> -> vector<2x8x16xf32>
    "tpu.trace_stop"() : () -> ()
    %35 = vector.extract_strided_slice %7 {offsets = [0, 16], sizes = [16, 16], strides = [1, 1]} : vector<16x192xf32> to vector<16x16xf32>
    %36 = vector.shape_cast %35 : vector<16x16xf32> to vector<2x8x16xf32>
    %37 = arith.truncf %36 : vector<2x8x16xf32> to vector<2x8x16xbf16>
    %38 = vector.extract_strided_slice %7 {offsets = [0, 80], sizes = [16, 16], strides = [1, 1]} : vector<16x192xf32> to vector<16x16xf32>
    %39 = vector.shape_cast %38 : vector<16x16xf32> to vector<2x8x16xf32>
    %40 = arith.truncf %39 : vector<2x8x16xf32> to vector<2x8x16xbf16>
    %41 = vector.extract_strided_slice %7 {offsets = [0, 144], sizes = [16, 16], strides = [1, 1]} : vector<16x192xf32> to vector<16x16xf32>
    %42 = vector.shape_cast %41 : vector<16x16xf32> to vector<2x8x16xf32>
    %43 = arith.truncf %42 : vector<2x8x16xf32> to vector<2x8x16xbf16>
    "tpu.trace_start"() <{level = 10 : i32, message = "bqd,bkd->bqk"}> : () -> ()
    %cst_14 = arith.constant dense<0.000000e+00> : vector<2x8x8xf32>
    %44 = tpu.matmul %37, %40, %cst_14 {dimension_numbers = #tpu.dot_dimension_numbers<[2], [2], [1], [1], [0, 0, 0, 1, 1, 1], [0], [0]>} : vector<2x8x16xbf16>, vector<2x8x16xbf16>, vector<2x8x8xf32> -> vector<2x8x8xf32>
    "tpu.trace_stop"() : () -> ()
    %cst_15 = arith.constant 0.353553385 : f32
    %45 = vector.broadcast %cst_15 : f32 to vector<2x8x8xf32>
    %46 = arith.mulf %44, %45 : vector<2x8x8xf32>
    %47 = vector.broadcast %8 : vector<2x1x8xf32> to vector<2x8x8xf32>
    %48 = arith.addf %46, %47 : vector<2x8x8xf32>
    %cst_16 = arith.constant dense<0xFF800000> : vector<2x8xf32>
    %49 = vector.multi_reduction <maximumf>, %48, %cst_16 [2] : vector<2x8x8xf32> to vector<2x8xf32>
    %50 = vector.shape_cast %49 : vector<2x8xf32> to vector<2x8x1xf32>
    %51 = vector.broadcast %50 : vector<2x8x1xf32> to vector<2x8x8xf32>
    %52 = arith.subf %48, %51 : vector<2x8x8xf32>
    %53 = math.exp %52 : vector<2x8x8xf32>
    %cst_17 = arith.constant dense<0.000000e+00> : vector<2x8xf32>
    %54 = vector.multi_reduction <add>, %53, %cst_17 [2] : vector<2x8x8xf32> to vector<2x8xf32>
    %55 = vector.shape_cast %54 : vector<2x8xf32> to vector<2x8x1xf32>
    %56 = tpu.reciprocal %55 {approx = true} : vector<2x8x1xf32> -> vector<2x8x1xf32>
    %57 = vector.broadcast %56 : vector<2x8x1xf32> to vector<2x8x8xf32>
    %58 = arith.mulf %53, %57 : vector<2x8x8xf32>
    %59 = arith.truncf %58 : vector<2x8x8xf32> to vector<2x8x8xbf16>
    "tpu.trace_start"() <{level = 10 : i32, message = "bqk,bkd->bqd"}> : () -> ()
    %cst_18 = arith.constant dense<0.000000e+00> : vector<2x8x16xf32>
    %60 = tpu.matmul %59, %43, %cst_18 {dimension_numbers = #tpu.dot_dimension_numbers<[2], [1], [1], [2], [0, 0, 0, 1, 1, 2], [0], [0]>} : vector<2x8x8xbf16>, vector<2x8x16xbf16>, vector<2x8x16xf32> -> vector<2x8x16xf32>
    "tpu.trace_stop"() : () -> ()
    %61 = vector.extract_strided_slice %7 {offsets = [0, 32], sizes = [16, 16], strides = [1, 1]} : vector<16x192xf32> to vector<16x16xf32>
    %62 = vector.shape_cast %61 : vector<16x16xf32> to vector<2x8x16xf32>
    %63 = arith.truncf %62 : vector<2x8x16xf32> to vector<2x8x16xbf16>
    %64 = vector.extract_strided_slice %7 {offsets = [0, 96], sizes = [16, 16], strides = [1, 1]} : vector<16x192xf32> to vector<16x16xf32>
    %65 = vector.shape_cast %64 : vector<16x16xf32> to vector<2x8x16xf32>
    %66 = arith.truncf %65 : vector<2x8x16xf32> to vector<2x8x16xbf16>
    %67 = vector.extract_strided_slice %7 {offsets = [0, 160], sizes = [16, 16], strides = [1, 1]} : vector<16x192xf32> to vector<16x16xf32>
    %68 = vector.shape_cast %67 : vector<16x16xf32> to vector<2x8x16xf32>
    %69 = arith.truncf %68 : vector<2x8x16xf32> to vector<2x8x16xbf16>
    "tpu.trace_start"() <{level = 10 : i32, message = "bqd,bkd->bqk"}> : () -> ()
    %cst_19 = arith.constant dense<0.000000e+00> : vector<2x8x8xf32>
    %70 = tpu.matmul %63, %66, %cst_19 {dimension_numbers = #tpu.dot_dimension_numbers<[2], [2], [1], [1], [0, 0, 0, 1, 1, 1], [0], [0]>} : vector<2x8x16xbf16>, vector<2x8x16xbf16>, vector<2x8x8xf32> -> vector<2x8x8xf32>
    "tpu.trace_stop"() : () -> ()
    %cst_20 = arith.constant 0.353553385 : f32
    %71 = vector.broadcast %cst_20 : f32 to vector<2x8x8xf32>
    %72 = arith.mulf %70, %71 : vector<2x8x8xf32>
    %73 = vector.broadcast %8 : vector<2x1x8xf32> to vector<2x8x8xf32>
    %74 = arith.addf %72, %73 : vector<2x8x8xf32>
    %cst_21 = arith.constant dense<0xFF800000> : vector<2x8xf32>
    %75 = vector.multi_reduction <maximumf>, %74, %cst_21 [2] : vector<2x8x8xf32> to vector<2x8xf32>
    %76 = vector.shape_cast %75 : vector<2x8xf32> to vector<2x8x1xf32>
    %77 = vector.broadcast %76 : vector<2x8x1xf32> to vector<2x8x8xf32>
    %78 = arith.subf %74, %77 : vector<2x8x8xf32>
    %79 = math.exp %78 : vector<2x8x8xf32>
    %cst_22 = arith.constant dense<0.000000e+00> : vector<2x8xf32>
    %80 = vector.multi_reduction <add>, %79, %cst_22 [2] : vector<2x8x8xf32> to vector<2x8xf32>
    %81 = vector.shape_cast %80 : vector<2x8xf32> to vector<2x8x1xf32>
    %82 = tpu.reciprocal %81 {approx = true} : vector<2x8x1xf32> -> vector<2x8x1xf32>
    %83 = vector.broadcast %82 : vector<2x8x1xf32> to vector<2x8x8xf32>
    %84 = arith.mulf %79, %83 : vector<2x8x8xf32>
    %85 = arith.truncf %84 : vector<2x8x8xf32> to vector<2x8x8xbf16>
    "tpu.trace_start"() <{level = 10 : i32, message = "bqk,bkd->bqd"}> : () -> ()
    %cst_23 = arith.constant dense<0.000000e+00> : vector<2x8x16xf32>
    %86 = tpu.matmul %85, %69, %cst_23 {dimension_numbers = #tpu.dot_dimension_numbers<[2], [1], [1], [2], [0, 0, 0, 1, 1, 2], [0], [0]>} : vector<2x8x8xbf16>, vector<2x8x16xbf16>, vector<2x8x16xf32> -> vector<2x8x16xf32>
    "tpu.trace_stop"() : () -> ()
    %87 = vector.extract_strided_slice %7 {offsets = [0, 48], sizes = [16, 16], strides = [1, 1]} : vector<16x192xf32> to vector<16x16xf32>
    %88 = vector.shape_cast %87 : vector<16x16xf32> to vector<2x8x16xf32>
    %89 = arith.truncf %88 : vector<2x8x16xf32> to vector<2x8x16xbf16>
    %90 = vector.extract_strided_slice %7 {offsets = [0, 112], sizes = [16, 16], strides = [1, 1]} : vector<16x192xf32> to vector<16x16xf32>
    %91 = vector.shape_cast %90 : vector<16x16xf32> to vector<2x8x16xf32>
    %92 = arith.truncf %91 : vector<2x8x16xf32> to vector<2x8x16xbf16>
    %93 = vector.extract_strided_slice %7 {offsets = [0, 176], sizes = [16, 16], strides = [1, 1]} : vector<16x192xf32> to vector<16x16xf32>
    %94 = vector.shape_cast %93 : vector<16x16xf32> to vector<2x8x16xf32>
    %95 = arith.truncf %94 : vector<2x8x16xf32> to vector<2x8x16xbf16>
    "tpu.trace_start"() <{level = 10 : i32, message = "bqd,bkd->bqk"}> : () -> ()
    %cst_24 = arith.constant dense<0.000000e+00> : vector<2x8x8xf32>
    %96 = tpu.matmul %89, %92, %cst_24 {dimension_numbers = #tpu.dot_dimension_numbers<[2], [2], [1], [1], [0, 0, 0, 1, 1, 1], [0], [0]>} : vector<2x8x16xbf16>, vector<2x8x16xbf16>, vector<2x8x8xf32> -> vector<2x8x8xf32>
    "tpu.trace_stop"() : () -> ()
    %cst_25 = arith.constant 0.353553385 : f32
    %97 = vector.broadcast %cst_25 : f32 to vector<2x8x8xf32>
    %98 = arith.mulf %96, %97 : vector<2x8x8xf32>
    %99 = vector.broadcast %8 : vector<2x1x8xf32> to vector<2x8x8xf32>
    %100 = arith.addf %98, %99 : vector<2x8x8xf32>
    %cst_26 = arith.constant dense<0xFF800000> : vector<2x8xf32>
    %101 = vector.multi_reduction <maximumf>, %100, %cst_26 [2] : vector<2x8x8xf32> to vector<2x8xf32>
    %102 = vector.shape_cast %101 : vector<2x8xf32> to vector<2x8x1xf32>
    %103 = vector.broadcast %102 : vector<2x8x1xf32> to vector<2x8x8xf32>
    %104 = arith.subf %100, %103 : vector<2x8x8xf32>
    %105 = math.exp %104 : vector<2x8x8xf32>
    %cst_27 = arith.constant dense<0.000000e+00> : vector<2x8xf32>
    %106 = vector.multi_reduction <add>, %105, %cst_27 [2] : vector<2x8x8xf32> to vector<2x8xf32>
    %107 = vector.shape_cast %106 : vector<2x8xf32> to vector<2x8x1xf32>
    %108 = tpu.reciprocal %107 {approx = true} : vector<2x8x1xf32> -> vector<2x8x1xf32>
    %109 = vector.broadcast %108 : vector<2x8x1xf32> to vector<2x8x8xf32>
    %110 = arith.mulf %105, %109 : vector<2x8x8xf32>
    %111 = arith.truncf %110 : vector<2x8x8xf32> to vector<2x8x8xbf16>
    "tpu.trace_start"() <{level = 10 : i32, message = "bqk,bkd->bqd"}> : () -> ()
    %cst_28 = arith.constant dense<0.000000e+00> : vector<2x8x16xf32>
    %112 = tpu.matmul %111, %95, %cst_28 {dimension_numbers = #tpu.dot_dimension_numbers<[2], [1], [1], [2], [0, 0, 0, 1, 1, 2], [0], [0]>} : vector<2x8x8xbf16>, vector<2x8x16xbf16>, vector<2x8x16xf32> -> vector<2x8x16xf32>
    "tpu.trace_stop"() : () -> ()
    %113 = tpu.concatenate %34, %60, %86, %112 in 2 : vector<2x8x16xf32>, vector<2x8x16xf32>, vector<2x8x16xf32>, vector<2x8x16xf32> -> vector<2x8x64xf32>
    %114 = vector.shape_cast %113 : vector<2x8x64xf32> to vector<16x64xf32>
    %115 = arith.truncf %114 : vector<16x64xf32> to vector<16x64xbf16>
    %c0_29 = arith.constant 0 : index
    %c0_30 = arith.constant 0 : index
    %116 = vector.load %arg5[%c0_29, %c0_30] : memref<64x32xbf16, #tpu.memory_space<vmem>>, vector<64x32xbf16>
    %cst_31 = arith.constant dense<0.000000e+00> : vector<16x32xf32>
    %117 = tpu.matmul %115, %116, %cst_31 {dimension_numbers = #tpu.dot_dimension_numbers<[1], [0], [0], [1], [0, 0, 1, 1], [], []>} : vector<16x64xbf16>, vector<64x32xbf16>, vector<16x32xf32> -> vector<16x32xf32>
    %c0_32 = arith.constant 0 : index
    %c0_33 = arith.constant 0 : index
    %118 = vector.load %arg6[%c0_32, %c0_33] : memref<1x32xf32, #tpu.memory_space<vmem>>, vector<1x32xf32>
    %119 = vector.broadcast %118 : vector<1x32xf32> to vector<16x32xf32>
    %120 = arith.addf %117, %119 : vector<16x32xf32>
    %c0_34 = arith.constant 0 : index
    %c0_35 = arith.constant 0 : index
    %121 = vector.load %arg7[%c0_34, %c0_35] : memref<1x32xf32, #tpu.memory_space<vmem>>, vector<1x32xf32>
    %c0_36 = arith.constant 0 : index
    %c0_37 = arith.constant 0 : index
    %122 = vector.load %arg8[%c0_36, %c0_37] : memref<1x32xf32, #tpu.memory_space<vmem>>, vector<1x32xf32>
    %cst_38 = arith.constant dense<0.000000e+00> : vector<16xf32>
    %123 = vector.multi_reduction <add>, %120, %cst_38 [1] : vector<16x32xf32> to vector<16xf32>
    %124 = vector.shape_cast %123 : vector<16xf32> to vector<16x1xf32>
    %cst_39 = arith.constant 3.200000e+01 : f32
    %125 = vector.broadcast %cst_39 : f32 to vector<16x1xf32>
    %126 = arith.divf %124, %125 : vector<16x1xf32>
    %127 = vector.broadcast %126 : vector<16x1xf32> to vector<16x32xf32>
    %128 = arith.subf %120, %127 : vector<16x32xf32>
    %129 = arith.mulf %128, %128 : vector<16x32xf32>
    %cst_40 = arith.constant dense<0.000000e+00> : vector<16xf32>
    %130 = vector.multi_reduction <add>, %129, %cst_40 [1] : vector<16x32xf32> to vector<16xf32>
    %131 = vector.shape_cast %130 : vector<16xf32> to vector<16x1xf32>
    %cst_41 = arith.constant 3.200000e+01 : f32
    %132 = vector.broadcast %cst_41 : f32 to vector<16x1xf32>
    %133 = arith.divf %131, %132 : vector<16x1xf32>
    %134 = vector.broadcast %126 : vector<16x1xf32> to vector<16x32xf32>
    %135 = arith.subf %120, %134 : vector<16x32xf32>
    %cst_42 = arith.constant 9.99999974E-6 : f32
    %136 = vector.broadcast %cst_42 : f32 to vector<16x1xf32>
    %137 = arith.addf %133, %136 : vector<16x1xf32>
    %138 = math.rsqrt %137 : vector<16x1xf32>
    %139 = vector.broadcast %138 : vector<16x1xf32> to vector<16x32xf32>
    %140 = arith.mulf %135, %139 : vector<16x32xf32>
    %141 = vector.broadcast %121 : vector<1x32xf32> to vector<16x32xf32>
    %142 = arith.mulf %140, %141 : vector<16x32xf32>
    %143 = vector.broadcast %122 : vector<1x32xf32> to vector<16x32xf32>
    %144 = arith.addf %142, %143 : vector<16x32xf32>
    %145 = arith.truncf %144 : vector<16x32xf32> to vector<16x32xbf16>
    %c0_43 = arith.constant 0 : index
    %c0_44 = arith.constant 0 : index
    %146 = vector.load %arg9[%c0_43, %c0_44] : memref<32x16xbf16, #tpu.memory_space<vmem>>, vector<32x16xbf16>
    %cst_45 = arith.constant dense<0.000000e+00> : vector<16x16xf32>
    %147 = tpu.matmul %145, %146, %cst_45 {dimension_numbers = #tpu.dot_dimension_numbers<[1], [0], [0], [1], [0, 0, 1, 1], [], []>} : vector<16x32xbf16>, vector<32x16xbf16>, vector<16x16xf32> -> vector<16x16xf32>
    %c0_46 = arith.constant 0 : index
    %c0_47 = arith.constant 0 : index
    %148 = vector.load %arg10[%c0_46, %c0_47] : memref<1x16xf32, #tpu.memory_space<vmem>>, vector<1x16xf32>
    %149 = vector.broadcast %148 : vector<1x16xf32> to vector<16x16xf32>
    %150 = arith.addf %147, %149 : vector<16x16xf32>
    %cst_48 = arith.constant 5.000000e-01 : f32
    %151 = vector.broadcast %cst_48 : f32 to vector<16x16xf32>
    %152 = arith.mulf %151, %150 : vector<16x16xf32>
    %cst_49 = arith.constant 0.707106769 : f32
    %153 = vector.broadcast %cst_49 : f32 to vector<16x16xf32>
    %154 = arith.mulf %150, %153 : vector<16x16xf32>
    %155 = math.erf %154 : vector<16x16xf32>
    %cst_50 = arith.constant 1.000000e+00 : f32
    %156 = vector.broadcast %cst_50 : f32 to vector<16x16xf32>
    %157 = arith.addf %156, %155 : vector<16x16xf32>
    %158 = arith.mulf %152, %157 : vector<16x16xf32>
    %159 = arith.truncf %158 : vector<16x16xf32> to vector<16x16xbf16>
    %c0_51 = arith.constant 0 : index
    %c0_52 = arith.constant 0 : index
    %160 = vector.load %arg11[%c0_51, %c0_52] : memref<16x32xbf16, #tpu.memory_space<vmem>>, vector<16x32xbf16>
    %cst_53 = arith.constant dense<0.000000e+00> : vector<16x32xf32>
    %161 = tpu.matmul %159, %160, %cst_53 {dimension_numbers = #tpu.dot_dimension_numbers<[1], [0], [0], [1], [0, 0, 1, 1], [], []>} : vector<16x16xbf16>, vector<16x32xbf16>, vector<16x32xf32> -> vector<16x32xf32>
    %c0_54 = arith.constant 0 : index
    %c0_55 = arith.constant 0 : index
    %162 = vector.load %arg12[%c0_54, %c0_55] : memref<1x32xf32, #tpu.memory_space<vmem>>, vector<1x32xf32>
    %163 = vector.broadcast %162 : vector<1x32xf32> to vector<16x32xf32>
    %164 = arith.addf %161, %163 : vector<16x32xf32>
    %c0_56 = arith.constant 0 : index
    %c0_57 = arith.constant 0 : index
    %165 = vector.load %arg13[%c0_56, %c0_57] : memref<1x32xf32, #tpu.memory_space<vmem>>, vector<1x32xf32>
    %c0_58 = arith.constant 0 : index
    %c0_59 = arith.constant 0 : index
    %166 = vector.load %arg14[%c0_58, %c0_59] : memref<1x32xf32, #tpu.memory_space<vmem>>, vector<1x32xf32>
    %cst_60 = arith.constant dense<0.000000e+00> : vector<16xf32>
    %167 = vector.multi_reduction <add>, %164, %cst_60 [1] : vector<16x32xf32> to vector<16xf32>
    %168 = vector.shape_cast %167 : vector<16xf32> to vector<16x1xf32>
    %cst_61 = arith.constant 3.200000e+01 : f32
    %169 = vector.broadcast %cst_61 : f32 to vector<16x1xf32>
    %170 = arith.divf %168, %169 : vector<16x1xf32>
    %171 = vector.broadcast %170 : vector<16x1xf32> to vector<16x32xf32>
    %172 = arith.subf %164, %171 : vector<16x32xf32>
    %173 = arith.mulf %172, %172 : vector<16x32xf32>
    %cst_62 = arith.constant dense<0.000000e+00> : vector<16xf32>
    %174 = vector.multi_reduction <add>, %173, %cst_62 [1] : vector<16x32xf32> to vector<16xf32>
    %175 = vector.shape_cast %174 : vector<16xf32> to vector<16x1xf32>
    %cst_63 = arith.constant 3.200000e+01 : f32
    %176 = vector.broadcast %cst_63 : f32 to vector<16x1xf32>
    %177 = arith.divf %175, %176 : vector<16x1xf32>
    %178 = vector.broadcast %170 : vector<16x1xf32> to vector<16x32xf32>
    %179 = arith.subf %164, %178 : vector<16x32xf32>
    %cst_64 = arith.constant 9.99999974E-6 : f32
    %180 = vector.broadcast %cst_64 : f32 to vector<16x1xf32>
    %181 = arith.addf %177, %180 : vector<16x1xf32>
    %182 = math.rsqrt %181 : vector<16x1xf32>
    %183 = vector.broadcast %182 : vector<16x1xf32> to vector<16x32xf32>
    %184 = arith.mulf %179, %183 : vector<16x32xf32>
    %185 = vector.broadcast %165 : vector<1x32xf32> to vector<16x32xf32>
    %186 = arith.mulf %184, %185 : vector<16x32xf32>
    %187 = vector.broadcast %166 : vector<1x32xf32> to vector<16x32xf32>
    %188 = arith.addf %186, %187 : vector<16x32xf32>
    %189 = vector.shape_cast %188 : vector<16x32xf32> to vector<2x8x32xf32>
    %c0_65 = arith.constant 0 : index
    %c0_66 = arith.constant 0 : index
    %c0_67 = arith.constant 0 : index
    %190 = vector.load %arg15[%c0_65, %c0_66, %c0_67] : memref<2x8x32xf32, #tpu.memory_space<vmem>>, vector<2x8x32xf32>
    tpu.vector_store %arg15[%c0_65, %c0_66, %c0_67], %189 {strides = array<i32>} : memref<2x8x32xf32, #tpu.memory_space<vmem>>, vector<2x8x32xf32>,
    return
  }
  func.func @transform_0(%arg0: i32) -> (i32, i32, i32) {
    %c0_i32 = arith.constant 0 : i32
    %c0_i32_0 = arith.constant 0 : i32
    %c0_i32_1 = arith.constant 0 : i32
    %c0_i32_2 = arith.constant 0 : i32
    return %c0_i32, %c0_i32_0, %c0_i32_1 : i32, i32, i32
  }
  func.func @transform_1(%arg0: i32) -> (i32, i32, i32) {
    %c0_i32 = arith.constant 0 : i32
    %c0_i32_0 = arith.constant 0 : i32
    %c0_i32_1 = arith.constant 0 : i32
    %c0_i32_2 = arith.constant 0 : i32
    return %c0_i32, %c0_i32_0, %c0_i32_1 : i32, i32, i32
  }
  func.func @transform_2(%arg0: i32) -> (i32, i32) {
    %c0_i32 = arith.constant 0 : i32
    %c0_i32_0 = arith.constant 0 : i32
    %c0_i32_1 = arith.constant 0 : i32
    return %c0_i32, %c0_i32_0 : i32, i32
  }
  func.func @transform_3(%arg0: i32) -> (i32, i32) {
    %c0_i32 = arith.constant 0 : i32
    %c0_i32_0 = arith.constant 0 : i32
    %c0_i32_1 = arith.constant 0 : i32
    return %c0_i32, %c0_i32_0 : i32, i32
  }
  func.func @transform_4(%arg0: i32) -> (i32, i32) {
    %c0_i32 = arith.constant 0 : i32
    %c0_i32_0 = arith.constant 0 : i32
    %c0_i32_1 = arith.constant 0 : i32
    return %c0_i32, %c0_i32_0 : i32, i32
  }
  func.func @transform_5(%arg0: i32) -> (i32, i32) {
    %c0_i32 = arith.constant 0 : i32
    %c0_i32_0 = arith.constant 0 : i32
    %c0_i32_1 = arith.constant 0 : i32
    return %c0_i32, %c0_i32_0 : i32, i32
  }
  func.func @transform_6(%arg0: i32) -> (i32, i32) {
    %c0_i32 = arith.constant 0 : i32
    %c0_i32_0 = arith.constant 0 : i32
    %c0_i32_1 = arith.constant 0 : i32
    return %c0_i32, %c0_i32_0 : i32, i32
  }
  func.func @transform_7(%arg0: i32) -> (i32, i32) {
    %c0_i32 = arith.constant 0 : i32
    %c0_i32_0 = arith.constant 0 : i32
    %c0_i32_1 = arith.constant 0 : i32
    return %c0_i32, %c0_i32_0 : i32, i32
  }
  func.func @transform_8(%arg0: i32) -> (i32, i32) {
    %c0_i32 = arith.constant 0 : i32
    %c0_i32_0 = arith.constant 0 : i32
    %c0_i32_1 = arith.constant 0 : i32
    return %c0_i32, %c0_i32_0 : i32, i32
  }
  func.func @transform_9(%arg0: i32) -> (i32, i32) {
    %c0_i32 = arith.constant 0 : i32
    %c0_i32_0 = arith.constant 0 : i32
    %c0_i32_1 = arith.constant 0 : i32
    return %c0_i32, %c0_i32_0 : i32, i32
  }
  func.func @transform_10(%arg0: i32) -> (i32, i32) {
    %c0_i32 = arith.constant 0 : i32
    %c0_i32_0 = arith.constant 0 : i32
    %c0_i32_1 = arith.constant 0 : i32
    return %c0_i32, %c0_i32_0 : i32, i32
  }
  func.func @transform_11(%arg0: i32) -> (i32, i32) {
    %c0_i32 = arith.constant 0 : i32
    %c0_i32_0 = arith.constant 0 : i32
    %c0_i32_1 = arith.constant 0 : i32
    return %c0_i32, %c0_i32_0 : i32, i32
  }
  func.func @transform_12(%arg0: i32) -> (i32, i32) {
    %c0_i32 = arith.constant 0 : i32
    %c0_i32_0 = arith.constant 0 : i32
    %c0_i32_1 = arith.constant 0 : i32
    return %c0_i32, %c0_i32_0 : i32, i32
  }
  func.func @transform_13(%arg0: i32) -> (i32, i32) {
    %c0_i32 = arith.constant 0 : i32
    %c0_i32_0 = arith.constant 0 : i32
    %c0_i32_1 = arith.constant 0 : i32
    return %c0_i32, %c0_i32_0 : i32, i32
  }
  func.func @transform_14(%arg0: i32) -> (i32, i32, i32) {
    %c0_i32 = arith.constant 0 : i32
    %c0_i32_0 = arith.constant 0 : i32
    %c0_i32_1 = arith.constant 0 : i32
    %c0_i32_2 = arith.constant 0 : i32
    return %c0_i32, %c0_i32_0, %c0_i32_1 : i32, i32, i32
  }
}

</mosaic_0001>

<bundles_post_ra>
// kernel: tpu_custom_call.1
= control target key start
LH: loop header
LB: loop body
LE: loop exit
PB: predicated region body
PF: predicated region fallthrough
CT: control target
= control target key end

     0   :  { %v1722_v2 = vmov 0   ;;  %vm88_vm0 = vcmask 261120   ;;  %s2097_s0 = inlined_call_operand.vmem [shape: f32[2,8,32], index: 0, kind: input, shape index: {}]   ;;  %s2098_s1 = inlined_call_operand.vmem [shape: f32[2,1,8], index: 1, kind: input, shape index: {}]   ;;  %s2099_s2 = inlined_call_operand.vmem [shape: bf16[32,192], index: 2, kind: input, shape index: {}]   ;;  %s2100_s3 = inlined_call_operand.vmem [shape: f32[1,192], index: 3, kind: input, shape index: {}]   ;;  %s2101_s4 = inlined_call_operand.vmem [shape: bf16[64,32], index: 4, kind: input, shape index: {}]   ;;  %s2102_s5 = inlined_call_operand.vmem [shape: f32[1,32], index: 5, kind: input, shape index: {}]   ;;  %s2103_s6 = inlined_call_operand.vmem [shape: f32[1,32], index: 6, kind: input, shape index: {}]   ;;  %s2104_s7 = inlined_call_operand.vmem [shape: f32[1,32], index: 7, kind: input, shape index: {}]   ;;  %s2105_s8 = inlined_call_operand.vmem [shape: bf16[32,16], index: 8, kind: input, shape index: {}]   ;;  %s2106_s9 = inlined_call_operand.vmem [shape: f32[1,16], index: 9, kind: input, shape index: {}]   ;;  %s2107_s10 = inlined_call_operand.vmem [shape: bf16[16,32], index: 10, kind: input, shape index: {}]   ;;  %s2108_s11 = inlined_call_operand.vmem [shape: f32[1,32], index: 11, kind: input, shape index: {}]   ;;  %s2109_s12 = inlined_call_operand.vmem [shape: f32[1,32], index: 12, kind: input, shape index: {}]   ;;  %s2110_s13 = inlined_call_operand.vmem [shape: f32[1,32], index: 13, kind: input, shape index: {}]   ;;  %s2111_s14 = inlined_call_operand.hbm [shape: f32[2,8,32], index: 14, kind: output, shape index: {}]  }
   0x1   :  { %v1641_v0 = vld [vmem:[%s2099_s2 + $0x4] ss:$8 sps:$4 sm:$0xff]   ;;  %v1643_v1 = vld [vmem:[%s2099_s2] ss:$8 sps:$4 sm:$0xff]   ;;  %124 = vmatprep.mubr.bf16.mxu0 %v1722_v2  ;;  %v1644_v3 = vld [vmem:[%s2099_s2 + $0x14] ss:$8 sps:$4 sm:$0xff]  }
   0x2   :  { %92 = vmatprep.subr.bf16.mxu0 %v1641_v0  ;;  %v1646_v4 = vld [vmem:[%s2099_s2 + $0x10] ss:$8 sps:$4 sm:$0xff]   ;;  %v49_v5 = vld [vmem:[%s2097_s0] sm:$0xff]  ;;  %v50_v6 = vld [vmem:[%s2097_s0 + $0x8] sm:$0xff] }
   0x3   :  { %93 = vmatpush1.bf16.msra.mxu0 %v1643_v1  ;;  %v51_v7 = vpack.c.bf16 %v50_v6, %v49_v5 }
   0x4   :  { %94 = vmatprep.subr.bf16.mxu0 %v1644_v3 }
   0x7   :  { %95 = vmatpush1.bf16.msra.mxu0 %v1646_v4 }
   0x8   :  { %19 = vsyncpa [#allocation3], 0  ;;  %v58_v8 = vlaneseq  ;;  %v1723_v10 = vmov 0.0   ;;  %v56_v12 = vld [vmem:[%s2100_s3] sm:$0x3]  ;;  %vm1724_vm1 = vmmov 0  }
   0x9   :  { %1491 = vmatprep.subr.bf16.mxu1 %v1723_v10  ;;  %1497 = vmatprep.subr.bf16.mxu0 %v1723_v10  ;;  %s1725_s0 = smov 64   ;;  %vm144_vm2 = vcmask 130048   ;;  %vm284_vm3 = vcmask 1043456   ;;  %v1869_v35 = vld [vmem:[%s2098_s1] ss:$0 sm:$0xff]  ;;  %vm256_vm4 = vcmask 64512  }
   0xa   :  { %1413 = vmatmul.mubr.msk.bf16.vlgmr.msra.gmra.mrb[0].mxu0 %vm88_vm0, %v51_v7  ;;  %v59_v9 = vshrl.u32 %v58_v8, 7  ;;  %1493 = vmatprep.mubr.msk.bf16.mxu1 %vm1724_vm1, %v1723_v10  ;;  %v1875_v42 = vld [vmem:[%s2098_s1 + $0x1] ss:$0 sm:$0xff]  ;;  %s1726_s29 = smov 48   ;;  %s1727_s1 = smov 112   ;;  %vm1076_vm5 = vcmask 392192  }
   0xb   :  { %1499 = vmatprep.mubr.msk.bf16.mxu0 %vm1724_vm1, %v1723_v10  ;;  %s1728_s30 = smov 32   ;;  %s1729_s15 = smov 96   ;;  %vm1119_vm6 = vcmask 523264  }
   0xc   :  { %v60_v11 = vsub.s32 0, %v59_v9  ;;  %v64_v22 = vsub.s32 1, %v59_v9  ;;  %s1730_s16 = smov 16   ;;  %s1731_s17 = smov 80  }
   0xd   :  { %s1732_s18 = smov [#allocation2]  }
   0xe   :  { %v61_v13 = vrot.slane %v56_v12, %v60_v11  ;;  %v65_v23 = vrot.slane %v56_v12, %v64_v22  ;;  %s1398_s19 = sshll.u32 %s1732_s18, 4  ;;  %s1399_s19 = int_to_ptr.vmem [resolvable:$true] %s1398_s19 }
   0xf   :  { %s1698_s20 = scalar_lea.vmem %s1399_s19, 256  ;;  %p1703_p1 = scmp.lt.s32.totalorder %s1399_s19, %s1399_s19 }
  0x10   :  { %p1699_p0 = scmp.ne.s32.totalorder %s1399_s19, %s1698_s20  ;;  %p1704_p2 = scmp.lt.s32.totalorder %s1698_s20, %s1698_s20 }
  0x12   :  { %p1705_p3 = por %p1704_p2, %p1703_p1 }
  0x14   :  { %p1706_p4 = pnand %p1705_p3, %p1699_p0 }
  0xdd   :  { %v126_v14 = vpop.f32.mrb[0].mxu0 }
  0xde   :  { %v127_v15 = vadd.f32 %v126_v14, %v61_v13  ;;  %v128_v16 = vpop.f32.mrb[1].mxu0 }
  0xdf   :  { %v130_v17 = vpop.f32.mrb[2].mxu0  ;;  %v129_v25 = vadd.f32 %v128_v16, %v65_v23 }
  0xe0   :  { %v1838_v18 = vpack.c.bf16 %v127_v15, %v127_v15  ;;  %v131_v19 = vadd.f32 %v130_v17, %v61_v13  ;;  %v132_v20 = vpop.f32.mrb[3].mxu0 }
  0xe1   :  { %v1846_v28 = vpack.c.bf16 %v129_v25, %v129_v25  ;;  %v133_v29 = vadd.f32 %v132_v20, %v65_v23 }
  0xe2   :  { %142 = vrot.lane.b32.xlu0 %v1838_v18, %s1725_s0  ;;  %v1841_v21 = vpack.c.bf16 %v131_v19, %v131_v19 }
  0xe3   :  { %v1850_v31 = vpack.c.bf16 %v133_v29, %v133_v29  ;;  %v286_v32 = vsel %vm284_vm3, %v1846_v28, 0 }
  0xe5   :  { %v332_v33 = vsel %vm284_vm3, %v1850_v31, 0 }
  0xe6   :  { %192 = vrot.lane.b32.xlu0 %v1841_v21, %s1725_s0 }
 0x154   :  { %v143_v24 = vpop.permute.xlu0 %142 }
 0x155   :  { %v149_v26 = vsel %vm144_vm2, %v143_v24, 0 }
 0x156   :  { %1492 = vmatpush3.bf16.xpose.msra.mxu1 %v149_v26 }
 0x157   :  { %1503 = vmatprep.subr.bf16.mxu1 %v1723_v10 }
 0x158   :  { %v193_v27 = vpop.permute.xlu0 %192 }
 0x159   :  { %v198_v30 = vsel %vm144_vm2, %v193_v27, 0 }
 0x15a   :  { %1498 = vmatpush3.bf16.xpose.msra.mxu0 %v198_v30 }
 0x15b   :  { %1509 = vmatprep.subr.bf16.mxu0 %v1723_v10 }
 0x15d   :  { %1494 = vmatmul.mubr.msk.bf16.vlgmr.msra.gmra.mrb[0].mxu1 %vm144_vm2, %v1838_v18 }
 0x15e   :  { %1504 = vmatpush3.bf16.msra.mxu1 %v286_v32  ;;  %1505 = vmatprep.mubr.msk.bf16.mxu1 %vm1724_vm1, %v1723_v10 }
 0x15f   :  { %1515 = vmatprep.subr.bf16.mxu1 %v1723_v10 }
 0x161   :  { %1500 = vmatmul.mubr.msk.bf16.vlgmr.msra.gmra.mrb[4].mxu0 %vm144_vm2, %v1841_v21 }
 0x162   :  { %1510 = vmatpush3.bf16.msra.mxu0 %v332_v33  ;;  %1511 = vmatprep.mubr.msk.bf16.mxu0 %vm1724_vm1, %v1723_v10 }
 0x163   :  { %1521 = vmatprep.subr.bf16.mxu0 %v1723_v10 }
 0x230   :  { %v185_v34 = vpop.f32.mrb[0].mxu1 }
 0x231   :  { %v240_v36 = vmul.f32 0.35355338, %v185_v34  ;;  %v1495_v37 = vpop.f32.mrb[1].mxu1 }
 0x232   :  { %v188_v38 = vpop.f32.mrb[2].mxu1 }
 0x233   :  { %v1496_v39 = vpop.f32.mrb[3].mxu1  ;;  %v254_v40 = vadd.f32 %v1869_v35, %v240_v36 }
 0x234   :  { %v234_v41 = vpop.f32.mrb[4].mxu0 }
 0x235   :  { %v241_v43 = vmul.f32 0.35355338, %v234_v41  ;;  %v1501_v44 = vpop.f32.mrb[5].mxu0  ;;  %v257_v45 = vsel %vm256_vm4, %v254_v40, -inf }
 0x236   :  { %258 = vmax.xlane.f32.xlu1 %v257_v45  ;;  %v237_v46 = vpop.f32.mrb[6].mxu0 }
 0x237   :  { %v1502_v47 = vpop.f32.mrb[7].mxu0  ;;  %v255_v48 = vadd.f32 %v1875_v42, %v241_v43 }
 0x239   :  { %v260_v49 = vsel %vm256_vm4, %v255_v48, -inf }
 0x23a   :  { %261 = vmax.xlane.f32.xlu1 %v260_v49 }
 0x24b   :  { %376 = vrot.lane.b32.xlu1 %v1838_v18, %s1726_s29 }
 0x24f   :  { %426 = vrot.lane.b32.xlu1 %v1841_v21, %s1726_s29 }
 0x2c3   :  { %v259_v50 = vpop.xlane.xlu1 %258 }
 0x2c4   :  { %v263_v51 = vsub.f32 %v254_v40, %v259_v50 }
 0x2c6   :  { %v265_v52 = vmul.f32 1.442695, %v263_v51 }
 0x2c7   :  { %v262_v53 = vpop.xlane.xlu1 %261 }
 0x2c8   :  { %1654 = vpow2.f32 %v265_v52  ;;  %v264_v54 = vsub.f32 %v255_v48, %v262_v53 }
 0x2ca   :  { %v267_v55 = vmul.f32 1.442695, %v264_v54 }
 0x2cb   :  { %v377_v60 = vpop.permute.xlu1 %376 }
 0x2cc   :  { %1656 = vpow2.f32 %v267_v55  ;;  %v382_v4 = vsel %vm144_vm2, %v377_v60, 0 }
 0x2cf   :  { %v427_v61 = vpop.permute.xlu1 %426 }
 0x2d0   :  { %v432_v7 = vsel %vm144_vm2, %v427_v61, 0 }
 0x2d2   :  { %v1655_v56 = vpop.eup %1654 }
 0x2d3   :  { %v269_v57 = vsel %vm256_vm4, %v1655_v56, 0.0 }
 0x2d4   :  { %270 = vadd.xlane.f32.xlu0 %v269_v57 }
 0x2d6   :  { %v1657_v58 = vpop.eup %1656 }
 0x2d7   :  { %v272_v59 = vsel %vm256_vm4, %v1657_v58, 0.0 }
 0x2d8   :  { %273 = vadd.xlane.f32.xlu1 %v272_v59 }
 0x2e9   :  { %374 = vrot.lane.b32.xlu1 %v1838_v18, %s1727_s1 }
 0x2ed   :  { %424 = vrot.lane.b32.xlu1 %v1841_v21, %s1727_s1 }
 0x361   :  { %v271_v62 = vpop.xlane.xlu0 %270 }
 0x362   :  { %1658 = vrcp.f32 %v271_v62 }
 0x365   :  { %v274_v63 = vpop.xlane.xlu1 %273 }
 0x366   :  { %1660 = vrcp.f32 %v274_v63 }
 0x369   :  { %v375_v8 = vpop.permute.xlu1 %374 }
 0x36c   :  { %v1659_v0 = vpop.eup %1658 }
 0x36d   :  { %v277_v1 = vmul.f32 %v1659_v0, %v1655_v56  ;;  %v425_v9 = vpop.permute.xlu1 %424 }
 0x36f   :  { %v279_v2 = vpack.c.bf16 %v277_v1, %v277_v1 }
 0x370   :  { %v1661_v3 = vpop.eup %1660 }
 0x371   :  { %v278_v5 = vmul.f32 %v1661_v3, %v1657_v58  ;;  %1506 = vmatmul.mubr.msk.bf16.vlgmr.msra.gmra.mrb[4].mxu1 %vm256_vm4, %v279_v2 }
 0x372   :  { %1516 = vmatpush3.bf16.xpose.msra.mxu1 %v382_v4  ;;  %1517 = vmatprep.mubr.msk.bf16.mxu1 %vm1724_vm1, %v1723_v10 }
 0x373   :  { %v280_v6 = vpack.c.bf16 %v278_v5, %v278_v5  ;;  %1527 = vmatprep.subr.bf16.mxu1 %v1723_v10 }
 0x375   :  { %1512 = vmatmul.mubr.msk.bf16.vlgmr.msra.gmra.mrb[8].mxu0 %vm256_vm4, %v280_v6 }
 0x376   :  { %1522 = vmatpush3.bf16.xpose.msra.mxu0 %v432_v7  ;;  %1523 = vmatprep.mubr.msk.bf16.mxu0 %vm1724_vm1, %v1723_v10 }
 0x377   :  { %1533 = vmatprep.subr.bf16.mxu0 %v1723_v10 }
 0x379   :  { %1518 = vmatmul.mubr.msk.bf16.vlgmr.msra.gmra.mrb[8].mxu1 %vm144_vm2, %v375_v8 }
 0x37a   :  { %1529 = vmatprep.mubr.msk.bf16.mxu1 %vm1724_vm1, %v1723_v10 }
 0x37d   :  { %1524 = vmatmul.mubr.msk.bf16.vlgmr.msra.gmra.mrb[12].mxu0 %vm144_vm2, %v425_v9 }
 0x37e   :  { %1535 = vmatprep.mubr.msk.bf16.mxu0 %vm1724_vm1, %v1723_v10 }
 0x444   :  { %v1906_v11 = vpop.f32.mrb[4].mxu1 }
 0x445   :  { %v1507_v12 = vpop.f32.mrb[5].mxu1 }
 0x446   :  { %v325_v13 = vpop.f32.mrb[6].mxu1 }
 0x447   :  { %v1508_v14 = vpop.f32.mrb[7].mxu1 }
 0x448   :  { %v1908_v15 = vpop.f32.mrb[8].mxu0 }
 0x449   :  { %v1513_v16 = vpop.f32.mrb[9].mxu0 }
 0x44a   :  { %v371_v17 = vpop.f32.mrb[10].mxu0 }
 0x44b   :  { %v1514_v19 = vpop.f32.mrb[11].mxu0 }
 0x44c   :  { %v418_v20 = vpop.f32.mrb[8].mxu1 }
 0x44d   :  { %v474_v22 = vmul.f32 0.35355338, %v418_v20  ;;  %v1519_v23 = vpop.f32.mrb[9].mxu1 }
 0x44e   :  { %v421_v24 = vpop.f32.mrb[10].mxu1 }
 0x44f   :  { %v1520_v25 = vpop.f32.mrb[11].mxu1  ;;  %v476_v26 = vadd.f32 %v1869_v35, %v474_v22 }
 0x450   :  { %v468_v27 = vpop.f32.mrb[12].mxu0 }
 0x451   :  { %v475_v29 = vmul.f32 0.35355338, %v468_v27  ;;  %v1525_v30 = vpop.f32.mrb[13].mxu0  ;;  %v478_v32 = vsel %vm256_vm4, %v476_v26, -inf }
 0x452   :  { %v471_v33 = vpop.f32.mrb[14].mxu0  ;;  %479 = vmax.xlane.f32.xlu0 %v478_v32 }
 0x453   :  { %v1526_v34 = vpop.f32.mrb[15].mxu0  ;;  %v477_v36 = vadd.f32 %v1875_v42, %v475_v29 }
 0x455   :  { %v481_v37 = vsel %vm256_vm4, %v477_v36, -inf }
 0x456   :  { %482 = vmax.xlane.f32.xlu1 %v481_v37 }
 0x467   :  { %652 = vrot.lane.b32.xlu1 %v1841_v21, %s1728_s30 }
 0x468   :  { %503 = vrot.lane.b32.xlu0 %v1846_v28, %s1727_s1 }
 0x46c   :  { %552 = vrot.lane.b32.xlu0 %v1850_v31, %s1727_s1 }
 0x4df   :  { %v480_v38 = vpop.xlane.xlu0 %479 }
 0x4e0   :  { %v484_v39 = vsub.f32 %v476_v26, %v480_v38 }
 0x4e2   :  { %v486_v40 = vmul.f32 1.442695, %v484_v39 }
 0x4e3   :  { %v483_v41 = vpop.xlane.xlu1 %482  ;;  %v504_v43 = vpop.permute.xlu0 %503 }
 0x4e4   :  { %1662 = vpow2.f32 %v486_v40  ;;  %v485_v44 = vsub.f32 %v477_v36, %v483_v41  ;;  %v509_v45 = vsel %vm284_vm3, %v504_v43, 0 }
 0x4e5   :  { %1528 = vmatpush3.bf16.msra.mxu1 %v509_v45 }
 0x4e6   :  { %v488_v46 = vmul.f32 1.442695, %v485_v44  ;;  %1539 = vmatprep.subr.bf16.mxu1 %v1723_v10 }
 0x4e7   :  { %v553_v47 = vpop.permute.xlu0 %552  ;;  %v653_v62 = vpop.permute.xlu1 %652 }
 0x4e8   :  { %1664 = vpow2.f32 %v488_v46  ;;  %v558_v48 = vsel %vm284_vm3, %v553_v47, 0  ;;  %v658_v0 = vsel %vm144_vm2, %v653_v62, 0 }
 0x4e9   :  { %1534 = vmatpush3.bf16.msra.mxu0 %v558_v48 }
 0x4ea   :  { %1545 = vmatprep.subr.bf16.mxu0 %v1723_v10 }
 0x4ee   :  { %v1663_v49 = vpop.eup %1662 }
 0x4ef   :  { %v490_v50 = vsel %vm256_vm4, %v1663_v49, 0.0 }
 0x4f0   :  { %491 = vadd.xlane.f32.xlu0 %v490_v50 }
 0x4f2   :  { %v1665_v51 = vpop.eup %1664 }
 0x4f3   :  { %v493_v52 = vsel %vm256_vm4, %v1665_v51, 0.0 }
 0x4f4   :  { %494 = vadd.xlane.f32.xlu0 %v493_v52 }
 0x50a   :  { %602 = vrot.lane.b32.xlu0 %v1838_v18, %s1728_s30 }
 0x50e   :  { %600 = vrot.lane.b32.xlu0 %v1838_v18, %s1729_s15 }
 0x512   :  { %650 = vrot.lane.b32.xlu0 %v1841_v21, %s1729_s15 }
 0x57d   :  { %v492_v53 = vpop.xlane.xlu0 %491 }
 0x57e   :  { %1666 = vrcp.f32 %v492_v53 }
 0x581   :  { %v495_v54 = vpop.xlane.xlu0 %494 }
 0x582   :  { %1668 = vrcp.f32 %v495_v54 }
 0x585   :  { %v603_v57 = vpop.permute.xlu0 %602 }
 0x586   :  { %v608_v61 = vsel %vm144_vm2, %v603_v57, 0 }
 0x588   :  { %v1667_v55 = vpop.eup %1666 }
 0x589   :  { %v498_v56 = vmul.f32 %v1667_v55, %v1663_v49  ;;  %v601_v1 = vpop.permute.xlu0 %600 }
 0x58b   :  { %v500_v58 = vpack.c.bf16 %v498_v56, %v498_v56 }
 0x58c   :  { %v1669_v59 = vpop.eup %1668 }
 0x58d   :  { %v499_v60 = vmul.f32 %v1669_v59, %v1665_v51  ;;  %1530 = vmatmul.mubr.msk.bf16.vlgmr.msra.gmra.mrb[12].mxu1 %vm256_vm4, %v500_v58  ;;  %v651_v2 = vpop.permute.xlu0 %650 }
 0x58e   :  { %1540 = vmatpush3.bf16.xpose.msra.mxu1 %v608_v61  ;;  %1541 = vmatprep.mubr.msk.bf16.mxu1 %vm1724_vm1, %v1723_v10 }
 0x58f   :  { %v501_v63 = vpack.c.bf16 %v499_v60, %v499_v60  ;;  %1551 = vmatprep.subr.bf16.mxu1 %v1723_v10 }
 0x591   :  { %1536 = vmatmul.mubr.msk.bf16.vlgmr.msra.gmra.mrb[16].mxu0 %vm256_vm4, %v501_v63 }
 0x592   :  { %1546 = vmatpush3.bf16.xpose.msra.mxu0 %v658_v0  ;;  %1547 = vmatprep.mubr.msk.bf16.mxu0 %vm1724_vm1, %v1723_v10 }
 0x593   :  { %1557 = vmatprep.subr.bf16.mxu0 %v1723_v10 }
 0x595   :  { %1542 = vmatmul.mubr.msk.bf16.vlgmr.msra.gmra.mrb[16].mxu1 %vm144_vm2, %v601_v1 }
 0x596   :  { %1553 = vmatprep.mubr.msk.bf16.mxu1 %vm1724_vm1, %v1723_v10 }
 0x599   :  { %1548 = vmatmul.mubr.msk.bf16.vlgmr.msra.gmra.mrb[20].mxu0 %vm144_vm2, %v651_v2 }
 0x59a   :  { %1559 = vmatprep.mubr.msk.bf16.mxu0 %vm1724_vm1, %v1723_v10 }
 0x660   :  { %v1948_v3 = vpop.f32.mrb[12].mxu1 }
 0x661   :  { %v1531_v4 = vpop.f32.mrb[13].mxu1 }
 0x662   :  { %v548_v5 = vpop.f32.mrb[14].mxu1 }
 0x663   :  { %v1532_v6 = vpop.f32.mrb[15].mxu1 }
 0x664   :  { %v1950_v7 = vpop.f32.mrb[16].mxu0 }
 0x665   :  { %v1626_v8 = vpack.i.bf16 %v1950_v7, %v1948_v3  ;;  %v1537_v9 = vpop.f32.mrb[17].mxu0 }
 0x666   :  { %v597_v12 = vpop.f32.mrb[18].mxu0 }
 0x667   :  { %v1538_v13 = vpop.f32.mrb[19].mxu0 }
 0x668   :  { %v644_v14 = vpop.f32.mrb[16].mxu1 }
 0x669   :  { %v700_v16 = vmul.f32 0.35355338, %v644_v14  ;;  %v1543_v17 = vpop.f32.mrb[17].mxu1 }
 0x66a   :  { %v647_v19 = vpop.f32.mrb[18].mxu1 }
 0x66b   :  { %v1544_v20 = vpop.f32.mrb[19].mxu1  ;;  %v702_v22 = vadd.f32 %v1869_v35, %v700_v16 }
 0x66c   :  { %v694_v23 = vpop.f32.mrb[20].mxu0 }
 0x66d   :  { %v701_v24 = vmul.f32 0.35355338, %v694_v23  ;;  %v1549_v25 = vpop.f32.mrb[21].mxu0  ;;  %v704_v26 = vsel %vm256_vm4, %v702_v22, -inf }
 0x66e   :  { %v697_v27 = vpop.f32.mrb[22].mxu0  ;;  %705 = vmax.xlane.f32.xlu0 %v704_v26 }
 0x66f   :  { %v1550_v29 = vpop.f32.mrb[23].mxu0  ;;  %v703_v30 = vadd.f32 %v1875_v42, %v701_v24 }
 0x671   :  { %v707_v32 = vsel %vm256_vm4, %v703_v30, -inf }
 0x672   :  { %708 = vmax.xlane.f32.xlu1 %v707_v32 }
 0x683   :  { %776 = vrot.lane.b32.xlu1 %v1850_v31, %s1729_s15 }
 0x684   :  { %728 = vrot.lane.b32.xlu0 %v1846_v28, %s1729_s15 }
 0x687   :  { %826 = vrot.lane.b32.xlu1 %v1838_v18, %s1730_s16 }
 0x68b   :  { %824 = vrot.lane.b32.xlu1 %v1838_v18, %s1731_s17 }
 0x6fb   :  { %v706_v33 = vpop.xlane.xlu0 %705 }
 0x6fc   :  { %v710_v34 = vsub.f32 %v702_v22, %v706_v33 }
 0x6fe   :  { %v712_v36 = vmul.f32 1.442695, %v710_v34 }
 0x6ff   :  { %v709_v37 = vpop.xlane.xlu1 %708  ;;  %v729_v38 = vpop.permute.xlu0 %728 }
 0x700   :  { %1670 = vpow2.f32 %v712_v36  ;;  %v711_v39 = vsub.f32 %v703_v30, %v709_v37  ;;  %v734_v40 = vsel %vm284_vm3, %v729_v38, 0 }
 0x701   :  { %1552 = vmatpush3.bf16.msra.mxu1 %v734_v40 }
 0x702   :  { %v714_v41 = vmul.f32 1.442695, %v711_v39  ;;  %1563 = vmatprep.subr.bf16.mxu1 %v1723_v10 }
 0x703   :  { %v777_v43 = vpop.permute.xlu1 %776 }
 0x704   :  { %1672 = vpow2.f32 %v714_v41  ;;  %v782_v44 = vsel %vm284_vm3, %v777_v43, 0 }
 0x705   :  { %1558 = vmatpush3.bf16.msra.mxu0 %v782_v44 }
 0x706   :  { %1569 = vmatprep.subr.bf16.mxu0 %v1723_v10 }
 0x707   :  { %v827_v52 = vpop.permute.xlu1 %826 }
 0x708   :  { %v832_v55 = vsel %vm144_vm2, %v827_v52, 0 }
 0x70a   :  { %v1671_v18 = vpop.eup %1670 }
 0x70b   :  { %v716_v45 = vsel %vm256_vm4, %v1671_v18, 0.0  ;;  %v825_v59 = vpop.permute.xlu1 %824 }
 0x70c   :  { %717 = vadd.xlane.f32.xlu0 %v716_v45 }
 0x70e   :  { %v1673_v46 = vpop.eup %1672 }
 0x70f   :  { %v719_v47 = vsel %vm256_vm4, %v1673_v46, 0.0 }
 0x710   :  { %720 = vadd.xlane.f32.xlu0 %v719_v47  ;;  %v1648_v47 = vld [vmem:[%s2101_s4 + $0x8] sm:$0xff]  }
 0x726   :  { %876 = vrot.lane.b32.xlu0 %v1841_v21, %s1730_s16 }
 0x72a   :  { %874 = vrot.lane.b32.xlu0 %v1841_v21, %s1731_s17 }
 0x799   :  { %v718_v48 = vpop.xlane.xlu0 %717 }
 0x79a   :  { %1674 = vrcp.f32 %v718_v48  ;;  %v1649_v48 = vld [vmem:[%s2101_s4 + $0x10] sm:$0xff]  }
 0x79d   :  { %v721_v49 = vpop.xlane.xlu0 %720 }
 0x79e   :  { %1676 = vrcp.f32 %v721_v49  ;;  %v1650_v49 = vld [vmem:[%s2101_s4 + $0x18] sm:$0xff]  }
 0x7a1   :  { %v877_v57 = vpop.permute.xlu0 %876 }
 0x7a2   :  { %v882_v58 = vsel %vm144_vm2, %v877_v57, 0 }
 0x7a4   :  { %v1675_v50 = vpop.eup %1674 }
 0x7a5   :  { %v724_v51 = vmul.f32 %v1675_v50, %v1671_v18  ;;  %v875_v60 = vpop.permute.xlu0 %874 }
 0x7a7   :  { %v726_v53 = vpack.c.bf16 %v724_v51, %v724_v51 }
 0x7a8   :  { %v1677_v54 = vpop.eup %1676 }
 0x7a9   :  { %v725_v56 = vmul.f32 %v1677_v54, %v1673_v46  ;;  %1554 = vmatmul.mubr.msk.bf16.vlgmr.msra.gmra.mrb[20].mxu1 %vm256_vm4, %v726_v53  ;;  %v1647_v46 = vld [vmem:[%s2101_s4] sm:$0xff]  }
 0x7aa   :  { %1564 = vmatpush3.bf16.xpose.msra.mxu1 %v832_v55  ;;  %1565 = vmatprep.mubr.msk.bf16.mxu1 %vm1724_vm1, %v1723_v10 }
 0x7ab   :  { %v727_v21 = vpack.c.bf16 %v725_v56, %v725_v56  ;;  %1575 = vmatprep.subr.bf16.mxu1 %v1723_v10 }
 0x7ad   :  { %1560 = vmatmul.mubr.msk.bf16.vlgmr.msra.gmra.mrb[24].mxu0 %vm256_vm4, %v727_v21 }
 0x7ae   :  { %1570 = vmatpush3.bf16.xpose.msra.mxu0 %v882_v58  ;;  %1571 = vmatprep.mubr.msk.bf16.mxu0 %vm1724_vm1, %v1723_v10 }
 0x7af   :  { %1581 = vmatprep.subr.bf16.mxu0 %v1723_v10 }
 0x7b1   :  { %1566 = vmatmul.mubr.msk.bf16.vlgmr.msra.gmra.mrb[24].mxu1 %vm144_vm2, %v825_v59 }
 0x7b2   :  { %1577 = vmatprep.mubr.msk.bf16.mxu1 %vm1724_vm1, %v1723_v10 }
 0x7b5   :  { %1572 = vmatmul.mubr.msk.bf16.vlgmr.msra.gmra.mrb[28].mxu0 %vm144_vm2, %v875_v60 }
 0x7b6   :  { %1583 = vmatprep.mubr.msk.bf16.mxu0 %vm1724_vm1, %v1723_v10 }
 0x87c   :  { %v770_v61 = vpop.f32.mrb[20].mxu1 }
 0x87d   :  { %v1555_v62 = vpop.f32.mrb[21].mxu1 }
 0x87e   :  { %v773_v63 = vpop.f32.mrb[22].mxu1 }
 0x87f   :  { %v1556_v0 = vpop.f32.mrb[23].mxu1 }
 0x880   :  { %v818_v1 = vpop.f32.mrb[24].mxu0 }
 0x881   :  { %v1631_v2 = vpack.i.bf16 %v818_v1, %v770_v61  ;;  %v1561_v4 = vpop.f32.mrb[25].mxu0 }
 0x882   :  { %v821_v5 = vpop.f32.mrb[26].mxu0 }
 0x883   :  { %v1562_v6 = vpop.f32.mrb[27].mxu0 }
 0x884   :  { %v868_v9 = vpop.f32.mrb[24].mxu1 }
 0x885   :  { %v924_v12 = vmul.f32 0.35355338, %v868_v9  ;;  %v1567_v13 = vpop.f32.mrb[25].mxu1 }
 0x886   :  { %v871_v14 = vpop.f32.mrb[26].mxu1 }
 0x887   :  { %v1568_v16 = vpop.f32.mrb[27].mxu1  ;;  %v926_v17 = vadd.f32 %v1869_v35, %v924_v12 }
 0x888   :  { %v918_v19 = vpop.f32.mrb[28].mxu0 }
 0x889   :  { %v925_v20 = vmul.f32 0.35355338, %v918_v19  ;;  %v1573_v22 = vpop.f32.mrb[29].mxu0  ;;  %v928_v23 = vsel %vm256_vm4, %v926_v17, -inf }
 0x88a   :  { %v921_v24 = vpop.f32.mrb[30].mxu0  ;;  %929 = vmax.xlane.f32.xlu1 %v928_v23 }
 0x88b   :  { %v1574_v25 = vpop.f32.mrb[31].mxu0  ;;  %v927_v26 = vadd.f32 %v1875_v42, %v925_v20 }
 0x88d   :  { %v931_v27 = vsel %vm256_vm4, %v927_v26, -inf }
 0x88e   :  { %932 = vmax.xlane.f32.xlu0 %v931_v27 }
 0x917   :  { %v930_v29 = vpop.xlane.xlu1 %929 }
 0x918   :  { %v934_v30 = vsub.f32 %v926_v17, %v930_v29 }
 0x91a   :  { %v936_v32 = vmul.f32 1.442695, %v934_v30 }
 0x91b   :  { %v933_v33 = vpop.xlane.xlu0 %932 }
 0x91c   :  { %1678 = vpow2.f32 %v936_v32  ;;  %v935_v34 = vsub.f32 %v927_v26, %v933_v33 }
 0x91e   :  { %v938_v35 = vmul.f32 1.442695, %v935_v34 }
 0x920   :  { %1680 = vpow2.f32 %v938_v35 }
 0x926   :  { %v1679_v36 = vpop.eup %1678 }
 0x927   :  { %v940_v37 = vsel %vm256_vm4, %v1679_v36, 0.0 }
 0x928   :  { %941 = vadd.xlane.f32.xlu0 %v940_v37  ;;  %v1651_v37 = vld [vmem:[%s2105_s8] sm:$0xff]  }
 0x92a   :  { %v1681_v38 = vpop.eup %1680 }
 0x92b   :  { %v943_v39 = vsel %vm256_vm4, %v1681_v38, 0.0 }
 0x92c   :  { %944 = vadd.xlane.f32.xlu1 %v943_v39 }
 0x93d   :  { %1000 = vrot.lane.b32.xlu1 %v1850_v31, %s1731_s17 }
 0x93e   :  { %952 = vrot.lane.b32.xlu0 %v1846_v28, %s1731_s17 }
 0x941   :  { %1627 = vrot.lane.b32.xlu1 %v1626_v8, %s1730_s16 }
 0x942   :  { %1632 = vrot.lane.b32.xlu0 %v1631_v2, %s1728_s30 }
 0x9b5   :  { %v942_v42 = vpop.xlane.xlu0 %941 }
 0x9b6   :  { %1682 = vrcp.f32 %v942_v42 }
 0x9b9   :  { %v953_v40 = vpop.permute.xlu0 %952  ;;  %v945_v41 = vpop.xlane.xlu1 %944 }
 0x9ba   :  { %v958_v43 = vsel %vm284_vm3, %v953_v40, 0  ;;  %1684 = vrcp.f32 %v945_v41 }
 0x9bb   :  { %1576 = vmatpush3.bf16.msra.mxu1 %v958_v43 }
 0x9bc   :  { %1587 = vmatprep.subr.bf16.mxu1 %v1723_v10 }
 0x9bd   :  { %v1001_v31 = vpop.permute.xlu1 %1000  ;;  %v1633_v61 = vpop.permute.xlu0 %1632 }
 0x9be   :  { %v1006_v28 = vsel %vm284_vm3, %v1001_v31, 0  ;;  %v1635_v0 = vunpack.i.h.bf16 %v1633_v61  ;;  %v1634_v1 = vunpack.i.l.bf16 %v1633_v61 }
 0x9bf   :  { %1582 = vmatpush3.bf16.msra.mxu0 %v1006_v28 }
 0x9c0   :  { %v1683_v44 = vpop.eup %1682  ;;  %1599 = vmatprep.subr.bf16.mxu0 %v1723_v10 }
 0x9c1   :  { %v948_v3 = vmul.f32 %v1683_v44, %v1679_v36  ;;  %v1628_v58 = vpop.permute.xlu1 %1627 }
 0x9c2   :  { %v1630_v59 = vunpack.i.h.bf16 %v1628_v58  ;;  %v1629_v60 = vunpack.i.l.bf16 %v1628_v58 }
 0x9c3   :  { %v950_v7 = vpack.c.bf16 %v948_v3, %v948_v3  ;;  %v1438_v3 = vld [vmem:[%s2103_s6] ss:$0 sm:$0xff] }
 0x9c4   :  { %v1685_v8 = vpop.eup %1684  ;;  %v1073_v62 = vsel %vm144_vm2, %v1908_v15, %v1630_v59  ;;  %v1072_v63 = vsel %vm144_vm2, %v1906_v11, %v1629_v60  ;;  %v1432_v15 = vld [vmem:[%s2102_s5] ss:$0 sm:$0xff] }
 0x9c5   :  { %v949_v18 = vmul.f32 %v1685_v8, %v1681_v38  ;;  %1578 = vmatmul.mubr.msk.bf16.vlgmr.msra.gmra.mrb[28].mxu1 %vm256_vm4, %v950_v7  ;;  %v1074_v6 = vsel %vm88_vm0, %v1072_v63, %v1634_v1  ;;  %v1075_v9 = vsel %vm88_vm0, %v1073_v62, %v1635_v0  ;;  %v1652_v38 = vld [vmem:[%s2105_s8 + $0x8] sm:$0xff]  }
 0x9c6   :  { %1595 = vmatprep.mubr.msk.bf16.mxu1 %vm1724_vm1, %v1723_v10  ;;  %1588 = vmatpush3.bf16.msra.mxu1 %v1647_v46 }
 0x9c7   :  { %v951_v45 = vpack.c.bf16 %v949_v18, %v949_v18  ;;  %1589 = vmatprep.subr.bf16.mxu1 %v1723_v10 }
 0x9c9   :  { %1584 = vmatmul.mubr.msk.bf16.vlgmr.msra.gmra.mrb[32].mxu0 %vm256_vm4, %v951_v45  ;;  %v1439_v45 = vld [vmem:[%s2104_s7] ss:$0 sm:$0xff] }
 0x9ca   :  { %1603 = vmatprep.mubr.msk.bf16.mxu0 %vm1724_vm1, %v1723_v10  ;;  %1590 = vmatpush3.bf16.msra.mxu1 %v1648_v47 }
 0x9cb   :  { %1591 = vmatprep.subr.bf16.mxu1 %v1723_v10  ;;  %1600 = vmatpush3.bf16.msra.mxu0 %v1651_v37  ;;  %v1447_v37 = vld [vmem:[%s2109_s12] ss:$0 sm:$0xff] }
 0x9cc   :  { %1601 = vmatprep.subr.bf16.mxu0 %v1723_v10 }
 0x9ce   :  { %1592 = vmatpush3.bf16.msra.mxu1 %v1649_v48 }
 0x9cf   :  { %1593 = vmatprep.subr.bf16.mxu1 %v1723_v10  ;;  %1602 = vmatpush3.bf16.msra.mxu0 %v1652_v38 }
 0x9d0   :  { %1607 = vmatprep.subr.bf16.mxu0 %v1723_v10 }
 0x9d2   :  { %1594 = vmatpush3.bf16.msra.mxu1 %v1650_v49 }
 0xa98   :  { %v994_v50 = vpop.f32.mrb[28].mxu1 }
 0xa99   :  { %v1579_v51 = vpop.f32.mrb[29].mxu1 }
 0xa9a   :  { %v997_v52 = vpop.f32.mrb[30].mxu1  ;;  %v1440_v51 = vld [vmem:[%s2106_s9] ss:$0 sm:$0xff] }
 0xa9b   :  { %v1580_v53 = vpop.f32.mrb[31].mxu1 }
 0xa9c   :  { %v1042_v54 = vpop.f32.mrb[32].mxu0 }
 0xa9d   :  { %v1636_v55 = vpack.i.bf16 %v1042_v54, %v994_v50  ;;  %v1585_v56 = vpop.f32.mrb[33].mxu0  ;;  %v1653_v50 = vld [vmem:[%s2107_s10] sm:$0xff]  }
 0xa9e   :  { %v1045_v57 = vpop.f32.mrb[34].mxu0 }
 0xa9f   :  { %v1586_v21 = vpop.f32.mrb[35].mxu0  ;;  %1637 = vrot.lane.b32.xlu1 %v1636_v55, %s1726_s29 }
 0xb11   :  { %v1638_v2 = vpop.permute.xlu1 %1637 }
 0xb12   :  { %v1640_v4 = vunpack.i.h.bf16 %v1638_v2  ;;  %v1639_v5 = vunpack.i.l.bf16 %v1638_v2 }
 0xb14   :  { %v1078_v12 = vsel %vm1076_vm5, %v1075_v9, %v1640_v4  ;;  %v1077_v13 = vsel %vm1076_vm5, %v1074_v6, %v1639_v5  ;;  %v1444_v4 = vld [vmem:[%s2108_s11] ss:$0 sm:$0xff] }
 0xb15   :  { %v1079_v14 = vpack.c.bf16 %v1078_v12, %v1077_v13 }
 0xb17   :  { %1596 = vmatmul.mubr.msk.bf16.vlgmr.msra.gmra.mrb[32].mxu1 %vm1119_vm6, %v1079_v14 }
 0xbea   :  { %v1157_v11 = vpop.f32.mrb[32].mxu1 }
 0xbeb   :  { %v1158_v16 = vadd.f32 %v1432_v15, %v1157_v11  ;;  %v1597_v17 = vpop.f32.mrb[33].mxu1 }
 0xbec   :  { %v1160_v19 = vpop.f32.mrb[34].mxu1 }
 0xbed   :  { %v1161_v20 = vadd.f32 %v1432_v15, %v1160_v19  ;;  %v1598_v22 = vpop.f32.mrb[35].mxu1  ;;  %v1166_v23 = vsel %vm88_vm0, %v1158_v16, 0.0 }
 0xbee   :  { %1167 = vadd.xlane.f32.xlu0 %v1166_v23 }
 0xbef   :  { %v1169_v24 = vsel %vm88_vm0, %v1161_v20, 0.0 }
 0xbf0   :  { %1170 = vadd.xlane.f32.xlu1 %v1169_v24 }
 0xc7b   :  { %v1168_v25 = vpop.xlane.xlu0 %1167 }
 0xc7c   :  { %v1173_v26 = vmul.f32 0.03125, %v1168_v25 }
 0xc7d   :  { %v1171_v27 = vpop.xlane.xlu1 %1170 }
 0xc7e   :  { %v1175_v29 = vsub.f32 %v1158_v16, %v1173_v26  ;;  %v1174_v30 = vmul.f32 0.03125, %v1171_v27 }
 0xc80   :  { %v1176_v32 = vsub.f32 %v1161_v20, %v1174_v30  ;;  %v1177_v33 = vmul.f32 %v1175_v29, %v1175_v29 }
 0xc82   :  { %v1179_v34 = vsel %vm88_vm0, %v1177_v33, 0.0  ;;  %v1178_v35 = vmul.f32 %v1176_v32, %v1176_v32 }
 0xc83   :  { %1180 = vadd.xlane.f32.xlu0 %v1179_v34 }
 0xc84   :  { %v1182_v36 = vsel %vm88_vm0, %v1178_v35, 0.0 }
 0xc87   :  { %1183 = vadd.xlane.f32.xlu0 %v1182_v36 }
 0xd10   :  { %v1181_v39 = vpop.xlane.xlu0 %1180 }
 0xd11   :  { %v1185_v42 = vmul.f32 0.03125, %v1181_v39 }
 0xd13   :  { %v1187_v40 = vadd.f32 1e-05, %v1185_v42  ;;  %v1448_v42 = vld [vmem:[%s2110_s13] ss:$0 sm:$0xff] }
 0xd14   :  { %v1184_v41 = vpop.xlane.xlu0 %1183 }
 0xd15   :  { %1686 = vrsqrt.f32 %v1187_v40  ;;  %v1186_v43 = vmul.f32 0.03125, %v1184_v41 }
 0xd17   :  { %v1188_v31 = vadd.f32 1e-05, %v1186_v43 }
 0xd19   :  { %1688 = vrsqrt.f32 %v1188_v31 }
 0xd1f   :  { %v1687_v28 = vpop.eup %1686 }
 0xd20   :  { %v1191_v44 = vmul.f32 %v1687_v28, %v1175_v29 }
 0xd22   :  { %v1199_v8 = vmul.f32 %v1438_v3, %v1191_v44 }
 0xd23   :  { %v1689_v7 = vpop.eup %1688 }
 0xd24   :  { %v1192_v18 = vmul.f32 %v1689_v7, %v1176_v32  ;;  %v1207_v47 = vadd.f32 %v1439_v45, %v1199_v8 }
 0xd26   :  { %v1200_v46 = vmul.f32 %v1438_v3, %v1192_v18 }
 0xd28   :  { %v1208_v48 = vadd.f32 %v1439_v45, %v1200_v46 }
 0xd2a   :  { %v1209_v49 = vpack.c.bf16 %v1208_v48, %v1207_v47 }
 0xd2c   :  { %1604 = vmatmul.mubr.msk.bf16.vlgmr.msra.gmra.mrb[36].mxu0 %vm88_vm0, %v1209_v49 }
 0xd2d   :  { %1609 = vmatprep.mubr.msk.bf16.mxu0 %vm1724_vm1, %v1723_v10  ;;  %1608 = vmatpush3.bf16.msra.mxu0 %v1653_v50 }
 0xdff   :  { %v1270_v52 = vpop.f32.mrb[36].mxu0 }
 0xe00   :  { %v1271_v53 = vadd.f32 %v1440_v51, %v1270_v52  ;;  %v1605_v54 = vpop.f32.mrb[37].mxu0 }
 0xe01   :  { %v1273_v55 = vpop.f32.mrb[38].mxu0 }
 0xe02   :  { %v1279_v56 = vmul.f32 0.70710677, %v1271_v53  ;;  %v1274_v57 = vadd.f32 %v1440_v51, %v1273_v55  ;;  %v1606_v21 = vpop.f32.mrb[39].mxu0  ;;  %v1277_v61 = vmul.f32 0.5, %v1271_v53 }
 0xe04   :  { %1690 = verf.f32 %v1279_v56  ;;  %v1280_v58 = vmul.f32 0.70710677, %v1274_v57  ;;  %v1278_v62 = vmul.f32 0.5, %v1274_v57 }
 0xe06   :  { %1692 = verf.f32 %v1280_v58 }
 0xe0e   :  { %v1691_v10 = vpop.eup %1690 }
 0xe0f   :  { %v1283_v59 = vadd.f32 1.0, %v1691_v10 }
 0xe10   :  { %v1693_v60 = vpop.eup %1692 }
 0xe11   :  { %v1284_v63 = vadd.f32 1.0, %v1693_v60  ;;  %v1285_v0 = vmul.f32 %v1283_v59, %v1277_v61 }
 0xe13   :  { %v1286_v1 = vmul.f32 %v1284_v63, %v1278_v62 }
 0xe15   :  { %v1287_v2 = vpack.c.bf16 %v1286_v1, %v1285_v0 }
 0xe17   :  { %1610 = vmatmul.mubr.msk.bf16.vlgmr.msra.gmra.mrb[40].mxu0 %vm144_vm2, %v1287_v2 }
 0xeea   :  { %v1340_v5 = vpop.f32.mrb[40].mxu0 }
 0xeeb   :  { %v1341_v6 = vadd.f32 %v1444_v4, %v1340_v5  ;;  %v1611_v9 = vpop.f32.mrb[41].mxu0 }
 0xeec   :  { %v1343_v12 = vpop.f32.mrb[42].mxu0 }
 0xeed   :  { %v1344_v13 = vadd.f32 %v1444_v4, %v1343_v12  ;;  %v1612_v14 = vpop.f32.mrb[43].mxu0  ;;  %v1349_v15 = vsel %vm88_vm0, %v1341_v6, 0.0 }
 0xeee   :  { %1350 = vadd.xlane.f32.xlu1 %v1349_v15 }
 0xeef   :  { %v1352_v11 = vsel %vm88_vm0, %v1344_v13, 0.0 }
 0xef0   :  { %1353 = vadd.xlane.f32.xlu0 %v1352_v11 }
 0xf7b   :  { %v1351_v16 = vpop.xlane.xlu1 %1350 }
 0xf7c   :  { %v1355_v17 = vmul.f32 0.03125, %v1351_v16 }
 0xf7d   :  { %v1354_v19 = vpop.xlane.xlu0 %1353 }
 0xf7e   :  { %v1357_v20 = vsub.f32 %v1341_v6, %v1355_v17  ;;  %v1356_v22 = vmul.f32 0.03125, %v1354_v19 }
 0xf80   :  { %v1358_v23 = vsub.f32 %v1344_v13, %v1356_v22  ;;  %v1359_v24 = vmul.f32 %v1357_v20, %v1357_v20 }
 0xf82   :  { %v1361_v25 = vsel %vm88_vm0, %v1359_v24, 0.0  ;;  %v1360_v26 = vmul.f32 %v1358_v23, %v1358_v23 }
 0xf83   :  { %1362 = vadd.xlane.f32.xlu1 %v1361_v25 }
 0xf84   :  { %v1364_v27 = vsel %vm88_vm0, %v1360_v26, 0.0 }
 0xf85   :  { %1365 = vadd.xlane.f32.xlu0 %v1364_v27 }
0x1010   :  { %v1363_v29 = vpop.xlane.xlu1 %1362 }
0x1011   :  { %v1367_v30 = vmul.f32 0.03125, %v1363_v29 }
0x1012   :  { %v1366_v32 = vpop.xlane.xlu0 %1365 }
0x1013   :  { %v1369_v33 = vadd.f32 1e-05, %v1367_v30  ;;  %v1368_v34 = vmul.f32 0.03125, %v1366_v32 }
0x1015   :  { %1694 = vrsqrt.f32 %v1369_v33  ;;  %v1370_v35 = vadd.f32 1e-05, %v1368_v34 }
0x1017   :  { %1696 = vrsqrt.f32 %v1370_v35 }
0x101f   :  { %v1695_v36 = vpop.eup %1694 }
0x1020   :  { %v1373_v38 = vmul.f32 %v1695_v36, %v1357_v20 }
0x1021   :  { %v1697_v39 = vpop.eup %1696 }
0x1022   :  { %v1374_v40 = vmul.f32 %v1697_v39, %v1358_v23  ;;  %v1381_v41 = vmul.f32 %v1447_v37, %v1373_v38 }
0x1024   :  { %v1382_v43 = vmul.f32 %v1447_v37, %v1374_v40  ;;  %v1389_v31 = vadd.f32 %v1448_v42, %v1381_v41 }
0x1026   :  { %v1390_v28 = vadd.f32 %v1448_v42, %v1382_v43  ;;  %1391 = vst.msk [vmem:[#allocation2] sm:$0xff] %vm88_vm0, %v1389_v31 }
0x1028   :  { %1392 = vst.msk [vmem:[#allocation2 + $0x8] sm:$0xff] %vm88_vm0, %v1390_v28 }
0x1029   :  { %1709 = shalt.err (!%p1706_p4)
}
0x102a   :  { %s1710_s21 = scalar_lea.hbm %s2111_s14, 256 }
0x102b   :  { %p1711_p5 = scmp.ne.s32.totalorder %s2111_s14, %s1710_s21  ;;  %p1714_p6 = scmp.lt.u32.totalorder %s1710_s21, %s2111_s14 }
0x102d   :  { %p1716_p7 = pnand %p1714_p6, %p1711_p5 }
0x102f   :  { %1719 = shalt.err (!%p1716_p7)
}
0x1030   :  { %s1733_s4 = smov 128   ;;  %s1734_s25 = smov 8  }
0x1031   :  { %1404 = dma.vmem_to_hbm [thread:$0]  %s1399_s19, 256, %s2111_s14, [#allocation3], %s1733_s4, %s1733_s4, %s1734_s25  }
0x1032   :  { %1720 = dma.done.wait [#allocation3], 256  }
0x1033   :  { %1721 = vsyncadd [#allocation3], 4294967040 }
0x1034   :  { %1408 = vsyncpa [#allocation3], 1 }

</bundles_post_ra>
